<compile_context>
chip_gen: v6e
topology: v6e:2x2x1
jax: 0.10.0
libtpu: 0.0.40
codegen_flags: <defaults>
</compile_context>

<pallas_src>
import jax
import jax.numpy as jnp
from jax.experimental import pallas as pl
from jax.experimental.pallas import tpu as pltpu

BN_EPS = 1e-5
LEAKY_SLOPE = 0.1


def _round_up(x, m):
    return (x + m - 1) // m * m


def _pad_cast(x, shape, dtype):
    """Cast then (only if needed) zero-pad a 2-D array to `shape`."""
    x = x.astype(dtype)
    if tuple(x.shape) == tuple(shape):
        return x
    out = jnp.zeros(shape, dtype)
    return out.at[:x.shape[0], :x.shape[1]].set(x)


# --------------------------- Pallas kernels ---------------------------------

def _conv_gemm_stats_kernel(a_ref, b_ref, o_ref, psum_ref, psq_ref, acc_ref):
    """bf16 GEMM tile with f32 accumulator; on the last k step it writes the
    bf16 output tile plus f32 per-column sum / sum-of-squares partials."""
    @pl.when(pl.program_id(2) == 0)
    def _():
        acc_ref[...] = jnp.zeros_like(acc_ref)

    acc_ref[...] += jnp.dot(a_ref[...], b_ref[...],
                            preferred_element_type=jnp.float32)

    @pl.when(pl.program_id(2) == pl.num_programs(2) - 1)
    def _():
        y = acc_ref[...]                                   # f32 (tm, tn)
        o_ref[...] = y.astype(o_ref.dtype)                 # bf16 store
        s = jnp.sum(y, axis=0, keepdims=True)              # (1, tn) f32
        sq = jnp.sum(y * y, axis=0, keepdims=True)         # (1, tn) f32
        psum_ref[...] = jnp.broadcast_to(s[:, None, :], psum_ref.shape)
        psq_ref[...] = jnp.broadcast_to(sq[:, None, :], psq_ref.shape)


def _bn_leaky_kernel(x_ref, scale_ref, shift_ref, o_ref):
    """y = leaky_relu(x * scale + shift); f32 math (x may be stored as bf16)."""
    x = x_ref[...].astype(jnp.float32)
    z = x * scale_ref[...] + shift_ref[...]
    o_ref[...] = jnp.where(z >= 0, z, LEAKY_SLOPE * z)


# --------------------------- kernel wrappers ---------------------------------

def conv_gemm_with_stats(a, b):
    """a: [M, K], b: [K, N]  ->  (y_padded[Mp, Np] bf16, col_sum[N] f32,
    col_sq[N] f32, Mp, Np).  MXU operands are bf16, accumulation is f32."""
    M, K = a.shape
    K2, N = b.shape
    assert K == K2

    # Tile selection: big MXU-friendly tiles; lane-dense N; reduction axis last.
    tm = 256 if M >= 256 else _round_up(M, 16)
    Mp = _round_up(M, tm)
    Np = _round_up(N, 128)
    tn = 256 if Np % 256 == 0 else 128
    Kp = _round_up(K, 128)
    if Kp % 1024 == 0:
        tk = 1024
    elif Kp % 512 == 0:
        tk = 512
    elif Kp % 256 == 0:
        tk = 256
    else:
        tk = 128

    a_p = _pad_cast(a, (Mp, Kp), jnp.bfloat16)
    b_p = _pad_cast(b, (Kp, Np), jnp.bfloat16)

    gi, gj, gk = Mp // tm, Np // tn, Kp // tk

    y, psum, psq = pl.pallas_call(
        _conv_gemm_stats_kernel,
        out_shape=(jax.ShapeDtypeStruct((Mp, Np), jnp.bfloat16),
                   jax.ShapeDtypeStruct((gi, 8, Np), jnp.float32),
                   jax.ShapeDtypeStruct((gi, 8, Np), jnp.float32)),
        grid_spec=pltpu.PrefetchScalarGridSpec(
            num_scalar_prefetch=0,
            grid=(gi, gj, gk),
            in_specs=[pl.BlockSpec((tm, tk), lambda i, j, k: (i, k)),
                      pl.BlockSpec((tk, tn), lambda i, j, k: (k, j))],
            out_specs=[pl.BlockSpec((tm, tn), lambda i, j, k: (i, j)),
                       pl.BlockSpec((1, 8, tn), lambda i, j, k: (i, 0, j)),
                       pl.BlockSpec((1, 8, tn), lambda i, j, k: (i, 0, j))],
            scratch_shapes=[pltpu.VMEM((tm, tn), jnp.float32)]),
        compiler_params=pltpu.CompilerParams(
            dimension_semantics=("parallel", "parallel", "arbitrary"),
            vmem_limit_bytes=32 * 1024 * 1024),
    )(a_p, b_p)

    # Rows within each (1, 8, tn) stats block are identical broadcasts; take row 0
    # of each i-block and reduce the (tiny) per-block partials in plain JAX.
    col_sum = jnp.sum(psum[:, 0, :], axis=0)[:N]
    col_sq = jnp.sum(psq[:, 0, :], axis=0)[:N]
    return y, col_sum, col_sq, Mp, Np


def _pick_row_tile(Mp, Np, bytes_per_el=4, cap=4 << 20):
    for cand in (2048, 1024, 512, 256, 128, 64, 32, 16, 8):
        if Mp % cand == 0 and cand * Np * bytes_per_el <= cap:
            return cand
    return Mp


def bn_leaky(y_pad, scale_p, shift_p):
    """y_pad: [Mp, Np] (bf16), scale/shift: [1, Np] f32 -> f32 [Mp, Np]."""
    Mp, Np = y_pad.shape
    tm = _pick_row_tile(Mp, Np)
    return pl.pallas_call(
        _bn_leaky_kernel,
        out_shape=jax.ShapeDtypeStruct((Mp, Np), jnp.float32),
        grid_spec=pltpu.PrefetchScalarGridSpec(
            num_scalar_prefetch=0,
            grid=(Mp // tm,),
            in_specs=[pl.BlockSpec((tm, Np), lambda i: (i, 0)),
                      pl.BlockSpec((1, Np), lambda i: (0, 0)),
                      pl.BlockSpec((1, Np), lambda i: (0, 0))],
            out_specs=pl.BlockSpec((tm, Np), lambda i: (i, 0))),
        compiler_params=pltpu.CompilerParams(
            dimension_semantics=("parallel",),
            vmem_limit_bytes=32 * 1024 * 1024),
    )(y_pad, scale_p, shift_p)


# --------------------------- model glue --------------------------------------

def im2col(x, k, stride, pad):
    """x: [N, H, W, C] NHWC -> patches [N*OH*OW, k*k*C] (row order (ki, kj, c))."""
    N, H, W, C = x.shape
    if pad:
        x = jnp.pad(x, ((0, 0), (pad, pad), (pad, pad), (0, 0)))
    Hp, Wp = H + 2 * pad, W + 2 * pad
    OH = (Hp - k) // stride + 1
    OW = (Wp - k) // stride + 1
    if k == 1 and stride == 1:
        return x.reshape(N * OH * OW, C), OH, OW
    cols = []
    for i in range(k):
        for j in range(k):
            cols.append(x[:, i:i + (OH - 1) * stride + 1:stride,
                          j:j + (OW - 1) * stride + 1:stride, :])
    patches = jnp.concatenate(cols, axis=-1)
    return patches.reshape(N * OH * OW, k * k * C), OH, OW


def cnn_block(x_nchw, w_hwio, gamma, beta, stride, padding):
    """Conv2d(bias=False) + BatchNorm2d(training batch stats) + LeakyReLU(0.1).

    x_nchw: [N, Cin, H, W]; w_hwio: [k, k, Cin, Cout]; returns [N, Cout, OH, OW].
    """
    x = jnp.transpose(x_nchw.astype(jnp.float32), (0, 2, 3, 1))   # NHWC
    k = w_hwio.shape[0]
    cin, cout = w_hwio.shape[2], w_hwio.shape[3]
    N = x.shape[0]

    patches, OH, OW = im2col(x, k, stride, padding)
    M = patches.shape[0]

    # Fused GEMM + per-column stats (one HBM pass over the activation).
    y_pad, col_sum, col_sq, Mp, Np = conv_gemm_with_stats(
        patches, w_hwio.reshape(k * k * cin, cout))

    mean = col_sum / M
    # NOTE: single-pass E[x^2]-E[x]^2 (clamped >= 0); sums are accumulated in f32.
    var = jnp.maximum(col_sq / M - mean * mean, 0.0)
    scale = gamma * jax.lax.rsqrt(var + BN_EPS)
    shift = beta - mean * scale

    scale_p = jnp.zeros((1, Np), jnp.float32).at[:, :cout].set(scale[None, :])
    shift_p = jnp.zeros((1, Np), jnp.float32).at[:, :cout].set(shift[None, :])

    out_pad = bn_leaky(y_pad, scale_p, shift_p)                   # f32 [Mp, Np]
    out = out_pad[:M, :cout].reshape(N, OH, OW, cout)
    return jnp.transpose(out, (0, 3, 1, 2))                       # back to NCHW


# --------------------------- demo --------------------------------------------

if __name__ == "__main__":
    BATCH, CIN, COUT = 2, 3, 32
    H = W = 16
    KSIZE, STRIDE, PAD = 3, 1, 1

    key = jax.random.PRNGKey(0)
    k1, k2, k3, k4 = jax.random.split(key, 4)
    x = jax.random.normal(k1, (BATCH, CIN, H, W), jnp.float32)
    w = jax.random.normal(k2, (KSIZE, KSIZE, CIN, COUT), jnp.float32) \
        / jnp.sqrt(KSIZE * KSIZE * CIN)
    gamma = 1.0 + 0.1 * jax.random.normal(k3, (COUT,), jnp.float32)
    beta = 0.1 * jax.random.normal(k4, (COUT,), jnp.float32)

    @jax.jit
    def run(x, w, gamma, beta):
        return cnn_block(x, w, gamma, beta, STRIDE, PAD)

    out = jax.block_until_ready(run(x, w, gamma, beta))
    assert out.shape == (BATCH, COUT, H, W), out.shape
    assert bool(jnp.all(jnp.isfinite(out)))
    print("KERNEL_OK")
</pallas_src>

<mosaic_0001>
module attributes {stable_mosaic.version = 11 : i64} {
  func.func @_conv_gemm_stats_kernel(%arg0: i32, %arg1: i32, %arg2: i32, %arg3: memref<256x128xbf16, #tpu.memory_space<vmem>>, %arg4: memref<128x128xbf16, #tpu.memory_space<vmem>>, %arg5: memref<256x128xbf16, #tpu.memory_space<vmem>>, %arg6: memref<1x8x128xf32, #tpu.memory_space<vmem>>, %arg7: memref<1x8x128xf32, #tpu.memory_space<vmem>>, %arg8: memref<256x128xf32, #tpu.memory_space<vmem>>) attributes {dimension_semantics = [#tpu.dimension_semantics<parallel>, #tpu.dimension_semantics<parallel>, #tpu.dimension_semantics<arbitrary>], iteration_bounds = array<i64: 2, 1, 1>, scalar_prefetch = 0 : i64, scratch_operands = 1 : i64, tpu.core_type = #tpu.core_type<tc>, window_params = [{transform_indices = @transform_0, window_bounds = array<i64: 256, 128>}, {transform_indices = @transform_1, window_bounds = array<i64: 128, 128>}, {transform_indices = @transform_2, window_bounds = array<i64: 256, 128>}, {transform_indices = @transform_3, window_bounds = array<i64: 1, 8, 128>}, {transform_indices = @transform_4, window_bounds = array<i64: 1, 8, 128>}]} {
    %c0_i32 = arith.constant 0 : i32
    %0 = arith.cmpi eq, %arg2, %c0_i32 : i32
    %1 = arith.extui %0 : i1 to i32
    %c0_i32_0 = arith.constant 0 : i32
    %2 = arith.cmpi ne, %1, %c0_i32_0 : i32
    scf.if %2 {
      %cst_10 = arith.constant 0.000000e+00 : f32
      %12 = vector.broadcast %cst_10 : f32 to vector<256x128xf32>
      %c0_11 = arith.constant 0 : index
      %c0_12 = arith.constant 0 : index
      %13 = vector.load %arg8[%c0_11, %c0_12] : memref<256x128xf32, #tpu.memory_space<vmem>>, vector<256x128xf32>
      tpu.vector_store %arg8[%c0_11, %c0_12], %12 {strides = array<i32>} : memref<256x128xf32, #tpu.memory_space<vmem>>, vector<256x128xf32>,
    } else {
    }
    %c0 = arith.constant 0 : index
    %c0_1 = arith.constant 0 : index
    %3 = vector.load %arg8[%c0, %c0_1] : memref<256x128xf32, #tpu.memory_space<vmem>>, vector<256x128xf32>
    %c0_2 = arith.constant 0 : index
    %c0_3 = arith.constant 0 : index
    %4 = vector.load %arg3[%c0_2, %c0_3] : memref<256x128xbf16, #tpu.memory_space<vmem>>, vector<256x128xbf16>
    %c0_4 = arith.constant 0 : index
    %c0_5 = arith.constant 0 : index
    %5 = vector.load %arg4[%c0_4, %c0_5] : memref<128x128xbf16, #tpu.memory_space<vmem>>, vector<128x128xbf16>
    %cst = arith.constant dense<0.000000e+00> : vector<256x128xf32>
    %6 = tpu.matmul %4, %5, %cst {dimension_numbers = #tpu.dot_dimension_numbers<[1], [0], [0], [1], [0, 0, 1, 1], [], []>} : vector<256x128xbf16>, vector<128x128xbf16>, vector<256x128xf32> -> vector<256x128xf32>
    %7 = arith.addf %3, %6 : vector<256x128xf32>
    %c0_6 = arith.constant 0 : index
    %c0_7 = arith.constant 0 : index
    %8 = vector.load %arg8[%c0_6, %c0_7] : memref<256x128xf32, #tpu.memory_space<vmem>>, vector<256x128xf32>
    tpu.vector_store %arg8[%c0_6, %c0_7], %7 {strides = array<i32>} : memref<256x128xf32, #tpu.memory_space<vmem>>, vector<256x128xf32>,
    %c0_i32_8 = arith.constant 0 : i32
    %9 = arith.cmpi eq, %arg2, %c0_i32_8 : i32
    %10 = arith.extui %9 : i1 to i32
    %c0_i32_9 = arith.constant 0 : i32
    %11 = arith.cmpi ne, %10, %c0_i32_9 : i32
    scf.if %11 {
      %c0_10 = arith.constant 0 : index
      %c0_11 = arith.constant 0 : index
      %12 = vector.load %arg8[%c0_10, %c0_11] : memref<256x128xf32, #tpu.memory_space<vmem>>, vector<256x128xf32>
      %13 = arith.truncf %12 : vector<256x128xf32> to vector<256x128xbf16>
      %c0_12 = arith.constant 0 : index
      %c0_13 = arith.constant 0 : index
      %14 = vector.load %arg5[%c0_12, %c0_13] : memref<256x128xbf16, #tpu.memory_space<vmem>>, vector<256x128xbf16>
      tpu.vector_store %arg5[%c0_12, %c0_13], %13 {strides = array<i32>} : memref<256x128xbf16, #tpu.memory_space<vmem>>, vector<256x128xbf16>,
      %cst_14 = arith.constant dense<0.000000e+00> : vector<128xf32>
      %15 = vector.multi_reduction <add>, %12, %cst_14 [0] : vector<256x128xf32> to vector<128xf32>
      %16 = vector.shape_cast %15 : vector<128xf32> to vector<1x128xf32>
      %17 = arith.mulf %12, %12 : vector<256x128xf32>
      %cst_15 = arith.constant dense<0.000000e+00> : vector<128xf32>
      %18 = vector.multi_reduction <add>, %17, %cst_15 [0] : vector<256x128xf32> to vector<128xf32>
      %19 = vector.shape_cast %18 : vector<128xf32> to vector<1x128xf32>
      %20 = vector.shape_cast %16 : vector<1x128xf32> to vector<1x1x128xf32>
      %21 = vector.shape_cast %20 : vector<1x1x128xf32> to vector<1x1x128xf32>
      %22 = vector.broadcast %21 : vector<1x1x128xf32> to vector<1x8x128xf32>
      %c0_16 = arith.constant 0 : index
      %c0_17 = arith.constant 0 : index
      %c0_18 = arith.constant 0 : index
      %23 = vector.load %arg6[%c0_16, %c0_17, %c0_18] : memref<1x8x128xf32, #tpu.memory_space<vmem>>, vector<1x8x128xf32>
      tpu.vector_store %arg6[%c0_16, %c0_17, %c0_18], %22 {strides = array<i32>} : memref<1x8x128xf32, #tpu.memory_space<vmem>>, vector<1x8x128xf32>,
      %24 = vector.shape_cast %19 : vector<1x128xf32> to vector<1x1x128xf32>
      %25 = vector.shape_cast %24 : vector<1x1x128xf32> to vector<1x1x128xf32>
      %26 = vector.broadcast %25 : vector<1x1x128xf32> to vector<1x8x128xf32>
      %c0_19 = arith.constant 0 : index
      %c0_20 = arith.constant 0 : index
      %c0_21 = arith.constant 0 : index
      %27 = vector.load %arg7[%c0_19, %c0_20, %c0_21] : memref<1x8x128xf32, #tpu.memory_space<vmem>>, vector<1x8x128xf32>
      tpu.vector_store %arg7[%c0_19, %c0_20, %c0_21], %26 {strides = array<i32>} : memref<1x8x128xf32, #tpu.memory_space<vmem>>, vector<1x8x128xf32>,
    } else {
    }
    return
  }
  func.func @transform_0(%arg0: i32, %arg1: i32, %arg2: i32) -> (i32, i32) {
    %c0_i32 = arith.constant 0 : i32
    return %arg0, %arg2 : i32, i32
  }
  func.func @transform_1(%arg0: i32, %arg1: i32, %arg2: i32) -> (i32, i32) {
    %c0_i32 = arith.constant 0 : i32
    return %arg2, %arg1 : i32, i32
  }
  func.func @transform_2(%arg0: i32, %arg1: i32, %arg2: i32) -> (i32, i32) {
    %c0_i32 = arith.constant 0 : i32
    return %arg0, %arg1 : i32, i32
  }
  func.func @transform_3(%arg0: i32, %arg1: i32, %arg2: i32) -> (i32, i32, i32) {
    %c0_i32 = arith.constant 0 : i32
    %c0_i32_0 = arith.constant 0 : i32
    return %arg0, %c0_i32, %arg1 : i32, i32, i32
  }
  func.func @transform_4(%arg0: i32, %arg1: i32, %arg2: i32) -> (i32, i32, i32) {
    %c0_i32 = arith.constant 0 : i32
    %c0_i32_0 = arith.constant 0 : i32
    return %arg0, %c0_i32, %arg1 : i32, i32, i32
  }
}

module attributes {stable_mosaic.version = 11 : i64} {
  func.func @_bn_leaky_kernel(%arg0: i32, %arg1: memref<512x128xbf16, #tpu.memory_space<vmem>>, %arg2: memref<1x128xf32, #tpu.memory_space<vmem>>, %arg3: memref<1x128xf32, #tpu.memory_space<vmem>>, %arg4: memref<512x128xf32, #tpu.memory_space<vmem>>) attributes {dimension_semantics = [#tpu.dimension_semantics<parallel>], iteration_bounds = array<i64: 1>, scalar_prefetch = 0 : i64, scratch_operands = 0 : i64, tpu.core_type = #tpu.core_type<tc>, window_params = [{transform_indices = @transform_0, window_bounds = array<i64: 512, 128>}, {pipeline_mode = #tpu.pipeline_mode<synchronous>, transform_indices = @transform_1, window_bounds = array<i64: 1, 128>}, {pipeline_mode = #tpu.pipeline_mode<synchronous>, transform_indices = @transform_2, window_bounds = array<i64: 1, 128>}, {transform_indices = @transform_3, window_bounds = array<i64: 512, 128>}]} {
    %c0 = arith.constant 0 : index
    %c0_0 = arith.constant 0 : index
    %0 = vector.load %arg1[%c0, %c0_0] : memref<512x128xbf16, #tpu.memory_space<vmem>>, vector<512x128xbf16>
    %1 = arith.extf %0 : vector<512x128xbf16> to vector<512x128xf32>
    %c0_1 = arith.constant 0 : index
    %c0_2 = arith.constant 0 : index
    %2 = vector.load %arg2[%c0_1, %c0_2] : memref<1x128xf32, #tpu.memory_space<vmem>>, vector<1x128xf32>
    %3 = vector.broadcast %2 : vector<1x128xf32> to vector<512x128xf32>
    %4 = arith.mulf %1, %3 : vector<512x128xf32>
    %c0_3 = arith.constant 0 : index
    %c0_4 = arith.constant 0 : index
    %5 = vector.load %arg3[%c0_3, %c0_4] : memref<1x128xf32, #tpu.memory_space<vmem>>, vector<1x128xf32>
    %6 = vector.broadcast %5 : vector<1x128xf32> to vector<512x128xf32>
    %7 = arith.addf %4, %6 : vector<512x128xf32>
    %cst = arith.constant 0.000000e+00 : f32
    %8 = vector.broadcast %cst : f32 to vector<512x128xf32>
    %9 = arith.cmpf oge, %7, %8 : vector<512x128xf32>
    %cst_5 = arith.constant 1.000000e-01 : f32
    %10 = vector.broadcast %cst_5 : f32 to vector<512x128xf32>
    %11 = arith.mulf %10, %7 : vector<512x128xf32>
    %12 = arith.select %9, %7, %11 : vector<512x128xi1>, vector<512x128xf32>
    %c0_6 = arith.constant 0 : index
    %c0_7 = arith.constant 0 : index
    %13 = vector.load %arg4[%c0_6, %c0_7] : memref<512x128xf32, #tpu.memory_space<vmem>>, vector<512x128xf32>
    tpu.vector_store %arg4[%c0_6, %c0_7], %12 {strides = array<i32>} : memref<512x128xf32, #tpu.memory_space<vmem>>, vector<512x128xf32>,
    return
  }
  func.func @transform_0(%arg0: i32) -> (i32, i32) {
    %c0_i32 = arith.constant 0 : i32
    %c0_i32_0 = arith.constant 0 : i32
    return %arg0, %c0_i32 : i32, i32
  }
  func.func @transform_1(%arg0: i32) -> (i32, i32) {
    %c0_i32 = arith.constant 0 : i32
    %c0_i32_0 = arith.constant 0 : i32
    %c0_i32_1 = arith.constant 0 : i32
    return %c0_i32, %c0_i32_0 : i32, i32
  }
  func.func @transform_2(%arg0: i32) -> (i32, i32) {
    %c0_i32 = arith.constant 0 : i32
    %c0_i32_0 = arith.constant 0 : i32
    %c0_i32_1 = arith.constant 0 : i32
    return %c0_i32, %c0_i32_0 : i32, i32
  }
  func.func @transform_3(%arg0: i32) -> (i32, i32) {
    %c0_i32 = arith.constant 0 : i32
    %c0_i32_0 = arith.constant 0 : i32
    return %arg0, %c0_i32 : i32, i32
  }
}

</mosaic_0001>

<bundles_post_ra>
// kernel: run.3
= control target key start
LH: loop header
LB: loop body
LE: loop exit
PB: predicated region body
PF: predicated region fallthrough
CT: control target
= control target key end

     0   :  { %s1003_s0 = inlined_call_operand.vmem [shape: bf16[512,128], index: 0, kind: input, shape index: {}]   ;;  %s1004_s1 = inlined_call_operand.vmem [shape: f32[1,128], index: 1, kind: input, shape index: {}]   ;;  %s1005_s2 = inlined_call_operand.vmem [shape: f32[1,128], index: 2, kind: input, shape index: {}]   ;;  %s1006_s3 = inlined_call_operand.hbm [shape: f32[512,128], index: 3, kind: output, shape index: {}]  }
   0x1   :  { %v560_v0 = vld [vmem:[%s1003_s0] sm:$0xff]   ;;  %v687_v4 = vld [vmem:[%s1003_s0 + $0x8] sm:$0xff]   ;;  %v688_v5 = vld [vmem:[%s1003_s0 + $0x10] sm:$0xff]  }
   0x2   :  { %v772_v1 = vld [vmem:[%s1004_s1] ss:$0 sm:$0xff]  ;;  %v561_v2 = vunpack.c.l.bf16 %v560_v0  ;;  %v562_v3 = vunpack.c.h.bf16 %v560_v0  ;;  %v689_v6 = vld [vmem:[%s1003_s0 + $0x18] sm:$0xff]   ;;  %v565_v8 = vunpack.c.l.bf16 %v687_v4  ;;  %v566_v9 = vunpack.c.h.bf16 %v687_v4  ;;  %v691_v36 = vld [vmem:[%s1003_s0 + $0x28] sm:$0xff]  }
   0x3   :  { %v786_v7 = vld [vmem:[%s1005_s2] ss:$0 sm:$0xff]  ;;  %v569_v10 = vunpack.c.l.bf16 %v688_v5  ;;  %v570_v11 = vunpack.c.h.bf16 %v688_v5  ;;  %v573_v14 = vunpack.c.l.bf16 %v689_v6  ;;  %v574_v15 = vunpack.c.h.bf16 %v689_v6  ;;  %v692_v48 = vld [vmem:[%s1003_s0 + $0x30] sm:$0xff]   ;;  %v693_v55 = vld [vmem:[%s1003_s0 + $0x38] sm:$0xff]  }
   0x4   :  { %v150_v12 = vmul.f32 %v561_v2, %v772_v1  ;;  %v151_v13 = vmul.f32 %v562_v3, %v772_v1  ;;  %v152_v16 = vmul.f32 %v565_v8, %v772_v1  ;;  %v153_v17 = vmul.f32 %v566_v9, %v772_v1  ;;  %v690_v28 = vld [vmem:[%s1003_s0 + $0x20] sm:$0xff]  }
   0x5   :  { %v154_v18 = vmul.f32 %v569_v10, %v772_v1  ;;  %v155_v19 = vmul.f32 %v570_v11, %v772_v1  ;;  %v156_v22 = vmul.f32 %v573_v14, %v772_v1  ;;  %v157_v23 = vmul.f32 %v574_v15, %v772_v1 }
   0x6   :  { %v221_v20 = vadd.f32 %v786_v7, %v150_v12  ;;  %v222_v21 = vadd.f32 %v786_v7, %v151_v13  ;;  %v223_v24 = vadd.f32 %v786_v7, %v152_v16  ;;  %v224_v25 = vadd.f32 %v786_v7, %v153_v17 }
   0x7   :  { %v225_v26 = vadd.f32 %v786_v7, %v154_v18  ;;  %v226_v27 = vadd.f32 %v786_v7, %v155_v19  ;;  %v227_v41 = vadd.f32 %v786_v7, %v156_v22  ;;  %v228_v42 = vadd.f32 %v786_v7, %v157_v23 }
   0x8   :  { %vm285_vm0 = vcmp.ge.f32.partialorder %v221_v20, 0.0  ;;  %v349_v29 = vmul.f32 0.1, %v221_v20  ;;  %vm286_vm1 = vcmp.ge.f32.partialorder %v222_v21, 0.0  ;;  %v350_v30 = vmul.f32 0.1, %v222_v21 }
   0x9   :  { %vm287_vm2 = vcmp.ge.f32.partialorder %v223_v24, 0.0  ;;  %v351_v31 = vmul.f32 0.1, %v223_v24  ;;  %vm288_vm3 = vcmp.ge.f32.partialorder %v224_v25, 0.0  ;;  %v352_v32 = vmul.f32 0.1, %v224_v25 }
   0xa   :  { %v413_v33 = vsel %vm285_vm0, %v221_v20, %v349_v29  ;;  %v414_v34 = vsel %vm286_vm1, %v222_v21, %v350_v30  ;;  %vm289_vm4 = vcmp.ge.f32.partialorder %v225_v26, 0.0  ;;  %v353_v35 = vmul.f32 0.1, %v225_v26 }
   0xb   :  { %477 = vst [vmem:[#allocation2] sm:$0xff] %v413_v33  ;;  %478 = vst [vmem:[#allocation2 + $0x8] sm:$0xff] %v414_v34  ;;  %v415_v37 = vsel %vm287_vm2, %v223_v24, %v351_v31  ;;  %v416_v38 = vsel %vm288_vm3, %v224_v25, %v352_v32  ;;  %vm290_vm5 = vcmp.ge.f32.partialorder %v226_v27, 0.0  ;;  %v354_v39 = vmul.f32 0.1, %v226_v27 }
   0xc   :  { %479 = vst [vmem:[#allocation2 + $0x10] sm:$0xff] %v415_v37  ;;  %480 = vst [vmem:[#allocation2 + $0x18] sm:$0xff] %v416_v38  ;;  %v417_v40 = vsel %vm289_vm4, %v225_v26, %v353_v35  ;;  %v577_v43 = vunpack.c.l.bf16 %v690_v28  ;;  %v578_v45 = vunpack.c.h.bf16 %v690_v28  ;;  %v581_v46 = vunpack.c.l.bf16 %v691_v36 }
   0xd   :  { %481 = vst [vmem:[#allocation2 + $0x20] sm:$0xff] %v417_v40  ;;  %v418_v44 = vsel %vm290_vm5, %v226_v27, %v354_v39  ;;  %v582_v47 = vunpack.c.h.bf16 %v691_v36  ;;  %vm291_vm6 = vcmp.ge.f32.partialorder %v227_v41, 0.0  ;;  %v355_v49 = vmul.f32 0.1, %v227_v41 }
   0xe   :  { %482 = vst [vmem:[#allocation2 + $0x28] sm:$0xff] %v418_v44  ;;  %vm292_vm7 = vcmp.ge.f32.partialorder %v228_v42, 0.0  ;;  %v356_v50 = vmul.f32 0.1, %v228_v42  ;;  %v158_v51 = vmul.f32 %v577_v43, %v772_v1  ;;  %v159_v52 = vmul.f32 %v578_v45, %v772_v1 }
   0xf   :  { %v160_v53 = vmul.f32 %v581_v46, %v772_v1  ;;  %v161_v54 = vmul.f32 %v582_v47, %v772_v1 }
  0x10   :  { %8 = vsyncpa [#allocation3], 0  ;;  %v419_v56 = vsel %vm291_vm6, %v227_v41, %v355_v49  ;;  %v420_v57 = vsel %vm292_vm7, %v228_v42, %v356_v50  ;;  %v585_v58 = vunpack.c.l.bf16 %v692_v48  ;;  %v586_v59 = vunpack.c.h.bf16 %v692_v48  ;;  %v694_v14 = vld [vmem:[%s1003_s0 + $0x40] sm:$0xff]   ;;  %v695_v19 = vld [vmem:[%s1003_s0 + $0x48] sm:$0xff]  }
  0x11   :  { %483 = vst [vmem:[#allocation2 + $0x30] sm:$0xff] %v419_v56  ;;  %484 = vst [vmem:[#allocation2 + $0x38] sm:$0xff] %v420_v57  ;;  %v229_v60 = vadd.f32 %v786_v7, %v158_v51  ;;  %v230_v61 = vadd.f32 %v786_v7, %v159_v52  ;;  %v231_v62 = vadd.f32 %v786_v7, %v160_v53  ;;  %v589_v3 = vunpack.c.l.bf16 %v693_v55  ;;  %v696_v30 = vld [vmem:[%s1003_s0 + $0x50] sm:$0xff]   ;;  %v697_v37 = vld [vmem:[%s1003_s0 + $0x58] sm:$0xff]  }
  0x12   :  { %v232_v63 = vadd.f32 %v786_v7, %v161_v54  ;;  %v162_v0 = vmul.f32 %v585_v58, %v772_v1  ;;  %v163_v2 = vmul.f32 %v586_v59, %v772_v1  ;;  %v590_v4 = vunpack.c.h.bf16 %v693_v55  ;;  %v698_v58 = vld [vmem:[%s1003_s0 + $0x60] sm:$0xff]  }
  0x13   :  { %vm293_vm8 = vcmp.ge.f32.partialorder %v229_v60, 0.0  ;;  %v357_v5 = vmul.f32 0.1, %v229_v60  ;;  %vm294_vm9 = vcmp.ge.f32.partialorder %v230_v61, 0.0  ;;  %v358_v6 = vmul.f32 0.1, %v230_v61 }
  0x14   :  { %vm295_vm10 = vcmp.ge.f32.partialorder %v231_v62, 0.0  ;;  %v359_v8 = vmul.f32 0.1, %v231_v62  ;;  %vm296_vm11 = vcmp.ge.f32.partialorder %v232_v63, 0.0  ;;  %v360_v9 = vmul.f32 0.1, %v232_v63 }
  0x15   :  { %v421_v10 = vsel %vm293_vm8, %v229_v60, %v357_v5  ;;  %v422_v11 = vsel %vm294_vm9, %v230_v61, %v358_v6  ;;  %v233_v12 = vadd.f32 %v786_v7, %v162_v0  ;;  %v234_v13 = vadd.f32 %v786_v7, %v163_v2 }
  0x16   :  { %485 = vst [vmem:[#allocation2 + $0x40] sm:$0xff] %v421_v10  ;;  %486 = vst [vmem:[#allocation2 + $0x48] sm:$0xff] %v422_v11  ;;  %v423_v15 = vsel %vm295_vm10, %v231_v62, %v359_v8  ;;  %v424_v16 = vsel %vm296_vm11, %v232_v63, %v360_v9  ;;  %v164_v17 = vmul.f32 %v589_v3, %v772_v1  ;;  %v593_v24 = vunpack.c.l.bf16 %v694_v14  ;;  %v699_v63 = vld [vmem:[%s1003_s0 + $0x68] sm:$0xff]  }
  0x17   :  { %v165_v18 = vmul.f32 %v590_v4, %v772_v1  ;;  %487 = vst [vmem:[#allocation2 + $0x50] sm:$0xff] %v423_v15  ;;  %488 = vst [vmem:[#allocation2 + $0x58] sm:$0xff] %v424_v16  ;;  %vm297_vm12 = vcmp.ge.f32.partialorder %v233_v12, 0.0  ;;  %v361_v20 = vmul.f32 0.1, %v233_v12  ;;  %vm298_vm13 = vcmp.ge.f32.partialorder %v234_v13, 0.0 }
  0x18   :  { %v362_v21 = vmul.f32 0.1, %v234_v13  ;;  %v235_v22 = vadd.f32 %v786_v7, %v164_v17  ;;  %v594_v25 = vunpack.c.h.bf16 %v694_v14  ;;  %v597_v28 = vunpack.c.l.bf16 %v695_v19 }
  0x19   :  { %v236_v23 = vadd.f32 %v786_v7, %v165_v18  ;;  %v425_v26 = vsel %vm297_vm12, %v233_v12, %v361_v20  ;;  %v598_v29 = vunpack.c.h.bf16 %v695_v19  ;;  %v166_v33 = vmul.f32 %v593_v24, %v772_v1  ;;  %v700_v12 = vld [vmem:[%s1003_s0 + $0x70] sm:$0xff]   ;;  %v701_v19 = vld [vmem:[%s1003_s0 + $0x78] sm:$0xff]  }
  0x1a   :  { %v426_v27 = vsel %vm298_vm13, %v234_v13, %v362_v21  ;;  %489 = vst [vmem:[#allocation2 + $0x60] sm:$0xff] %v425_v26  ;;  %vm299_vm14 = vcmp.ge.f32.partialorder %v235_v22, 0.0  ;;  %v363_v31 = vmul.f32 0.1, %v235_v22  ;;  %v167_v34 = vmul.f32 %v594_v25, %v772_v1 }
  0x1b   :  { %490 = vst [vmem:[#allocation2 + $0x68] sm:$0xff] %v426_v27  ;;  %vm300_vm15 = vcmp.ge.f32.partialorder %v236_v23, 0.0  ;;  %v364_v32 = vmul.f32 0.1, %v236_v23  ;;  %v168_v35 = vmul.f32 %v597_v28, %v772_v1  ;;  %v169_v36 = vmul.f32 %v598_v29, %v772_v1 }
  0x1c   :  { %v427_v38 = vsel %vm299_vm14, %v235_v22, %v363_v31  ;;  %v601_v40 = vunpack.c.l.bf16 %v696_v30  ;;  %v602_v41 = vunpack.c.h.bf16 %v696_v30  ;;  %v237_v42 = vadd.f32 %v786_v7, %v166_v33 }
  0x1d   :  { %v428_v39 = vsel %vm300_vm15, %v236_v23, %v364_v32  ;;  %491 = vst [vmem:[#allocation2 + $0x70] sm:$0xff] %v427_v38  ;;  %v238_v43 = vadd.f32 %v786_v7, %v167_v34  ;;  %v239_v44 = vadd.f32 %v786_v7, %v168_v35  ;;  %v240_v45 = vadd.f32 %v786_v7, %v169_v36 }
  0x1e   :  { %492 = vst [vmem:[#allocation2 + $0x78] sm:$0xff] %v428_v39  ;;  %v170_v46 = vmul.f32 %v601_v40, %v772_v1  ;;  %v171_v47 = vmul.f32 %v602_v41, %v772_v1  ;;  %v605_v48 = vunpack.c.l.bf16 %v697_v37  ;;  %v606_v49 = vunpack.c.h.bf16 %v697_v37  ;;  %v702_v40 = vld [vmem:[%s1003_s0 + $0x80] sm:$0xff]  }
  0x1f   :  { %vm301_vm0 = vcmp.ge.f32.partialorder %v237_v42, 0.0  ;;  %v365_v50 = vmul.f32 0.1, %v237_v42  ;;  %vm302_vm1 = vcmp.ge.f32.partialorder %v238_v43, 0.0  ;;  %v366_v51 = vmul.f32 0.1, %v238_v43 }
  0x20   :  { %vm303_vm2 = vcmp.ge.f32.partialorder %v239_v44, 0.0  ;;  %v367_v52 = vmul.f32 0.1, %v239_v44  ;;  %vm304_vm3 = vcmp.ge.f32.partialorder %v240_v45, 0.0  ;;  %v368_v53 = vmul.f32 0.1, %v240_v45 }
  0x21   :  { %v429_v54 = vsel %vm301_vm0, %v237_v42, %v365_v50  ;;  %v430_v55 = vsel %vm302_vm1, %v238_v43, %v366_v51  ;;  %v241_v56 = vadd.f32 %v786_v7, %v170_v46  ;;  %v242_v57 = vadd.f32 %v786_v7, %v171_v47 }
  0x22   :  { %493 = vst [vmem:[#allocation2 + $0x80] sm:$0xff] %v429_v54  ;;  %494 = vst [vmem:[#allocation2 + $0x88] sm:$0xff] %v430_v55  ;;  %v431_v59 = vsel %vm303_vm2, %v239_v44, %v367_v52  ;;  %v432_v60 = vsel %vm304_vm3, %v240_v45, %v368_v53  ;;  %v172_v61 = vmul.f32 %v605_v48, %v772_v1  ;;  %v609_v5 = vunpack.c.l.bf16 %v698_v58  ;;  %v703_v45 = vld [vmem:[%s1003_s0 + $0x88] sm:$0xff]  }
  0x23   :  { %v173_v62 = vmul.f32 %v606_v49, %v772_v1  ;;  %495 = vst [vmem:[#allocation2 + $0x90] sm:$0xff] %v431_v59  ;;  %496 = vst [vmem:[#allocation2 + $0x98] sm:$0xff] %v432_v60  ;;  %vm305_vm4 = vcmp.ge.f32.partialorder %v241_v56, 0.0  ;;  %v369_v0 = vmul.f32 0.1, %v241_v56  ;;  %vm306_vm5 = vcmp.ge.f32.partialorder %v242_v57, 0.0 }
  0x24   :  { %v370_v2 = vmul.f32 0.1, %v242_v57  ;;  %v243_v3 = vadd.f32 %v786_v7, %v172_v61  ;;  %v610_v6 = vunpack.c.h.bf16 %v698_v58  ;;  %v613_v10 = vunpack.c.l.bf16 %v699_v63 }
  0x25   :  { %v244_v4 = vadd.f32 %v786_v7, %v173_v62  ;;  %v433_v8 = vsel %vm305_vm4, %v241_v56, %v369_v0  ;;  %v614_v11 = vunpack.c.h.bf16 %v699_v63  ;;  %v174_v15 = vmul.f32 %v609_v5, %v772_v1  ;;  %v704_v56 = vld [vmem:[%s1003_s0 + $0x90] sm:$0xff]   ;;  %v705_v63 = vld [vmem:[%s1003_s0 + $0x98] sm:$0xff]  }
  0x26   :  { %v434_v9 = vsel %vm306_vm5, %v242_v57, %v370_v2  ;;  %497 = vst [vmem:[#allocation2 + $0xa0] sm:$0xff] %v433_v8  ;;  %vm307_vm6 = vcmp.ge.f32.partialorder %v243_v3, 0.0  ;;  %v371_v13 = vmul.f32 0.1, %v243_v3  ;;  %v175_v16 = vmul.f32 %v610_v6, %v772_v1 }
  0x27   :  { %498 = vst [vmem:[#allocation2 + $0xa8] sm:$0xff] %v434_v9  ;;  %vm308_vm7 = vcmp.ge.f32.partialorder %v244_v4, 0.0  ;;  %v372_v14 = vmul.f32 0.1, %v244_v4  ;;  %v176_v17 = vmul.f32 %v613_v10, %v772_v1  ;;  %v177_v18 = vmul.f32 %v614_v11, %v772_v1 }
  0x28   :  { %v435_v20 = vsel %vm307_vm6, %v243_v3, %v371_v13  ;;  %v617_v22 = vunpack.c.l.bf16 %v700_v12  ;;  %v618_v23 = vunpack.c.h.bf16 %v700_v12  ;;  %v245_v24 = vadd.f32 %v786_v7, %v174_v15 }
  0x29   :  { %v436_v21 = vsel %vm308_vm7, %v244_v4, %v372_v14  ;;  %499 = vst [vmem:[#allocation2 + $0xb0] sm:$0xff] %v435_v20  ;;  %v246_v25 = vadd.f32 %v786_v7, %v175_v16  ;;  %v247_v26 = vadd.f32 %v786_v7, %v176_v17  ;;  %v248_v27 = vadd.f32 %v786_v7, %v177_v18 }
  0x2a   :  { %500 = vst [vmem:[#allocation2 + $0xb8] sm:$0xff] %v436_v21  ;;  %v178_v28 = vmul.f32 %v617_v22, %v772_v1  ;;  %v179_v29 = vmul.f32 %v618_v23, %v772_v1  ;;  %v621_v30 = vunpack.c.l.bf16 %v701_v19  ;;  %v622_v31 = vunpack.c.h.bf16 %v701_v19  ;;  %v706_v22 = vld [vmem:[%s1003_s0 + $0xa0] sm:$0xff]  }
  0x2b   :  { %vm309_vm8 = vcmp.ge.f32.partialorder %v245_v24, 0.0  ;;  %v373_v32 = vmul.f32 0.1, %v245_v24  ;;  %vm310_vm9 = vcmp.ge.f32.partialorder %v246_v25, 0.0  ;;  %v374_v33 = vmul.f32 0.1, %v246_v25 }
  0x2c   :  { %vm311_vm10 = vcmp.ge.f32.partialorder %v247_v26, 0.0  ;;  %v375_v34 = vmul.f32 0.1, %v247_v26  ;;  %vm312_vm11 = vcmp.ge.f32.partialorder %v248_v27, 0.0  ;;  %v376_v35 = vmul.f32 0.1, %v248_v27 }
  0x2d   :  { %v437_v36 = vsel %vm309_vm8, %v245_v24, %v373_v32  ;;  %v438_v37 = vsel %vm310_vm9, %v246_v25, %v374_v33  ;;  %v249_v38 = vadd.f32 %v786_v7, %v178_v28  ;;  %v250_v39 = vadd.f32 %v786_v7, %v179_v29 }
  0x2e   :  { %501 = vst [vmem:[#allocation2 + $0xc0] sm:$0xff] %v437_v36  ;;  %502 = vst [vmem:[#allocation2 + $0xc8] sm:$0xff] %v438_v37  ;;  %v439_v41 = vsel %vm311_vm10, %v247_v26, %v375_v34  ;;  %v440_v42 = vsel %vm312_vm11, %v248_v27, %v376_v35  ;;  %v180_v43 = vmul.f32 %v621_v30, %v772_v1  ;;  %v625_v50 = vunpack.c.l.bf16 %v702_v40  ;;  %v707_v27 = vld [vmem:[%s1003_s0 + $0xa8] sm:$0xff]  }
  0x2f   :  { %v181_v44 = vmul.f32 %v622_v31, %v772_v1  ;;  %503 = vst [vmem:[#allocation2 + $0xd0] sm:$0xff] %v439_v41  ;;  %504 = vst [vmem:[#allocation2 + $0xd8] sm:$0xff] %v440_v42  ;;  %vm313_vm12 = vcmp.ge.f32.partialorder %v249_v38, 0.0  ;;  %v377_v46 = vmul.f32 0.1, %v249_v38  ;;  %vm314_vm13 = vcmp.ge.f32.partialorder %v250_v39, 0.0 }
  0x30   :  { %v378_v47 = vmul.f32 0.1, %v250_v39  ;;  %v251_v48 = vadd.f32 %v786_v7, %v180_v43  ;;  %v626_v51 = vunpack.c.h.bf16 %v702_v40  ;;  %v629_v54 = vunpack.c.l.bf16 %v703_v45 }
  0x31   :  { %v252_v49 = vadd.f32 %v786_v7, %v181_v44  ;;  %v441_v52 = vsel %vm313_vm12, %v249_v38, %v377_v46  ;;  %v630_v55 = vunpack.c.h.bf16 %v703_v45  ;;  %v182_v59 = vmul.f32 %v625_v50, %v772_v1  ;;  %v708_v38 = vld [vmem:[%s1003_s0 + $0xb0] sm:$0xff]   ;;  %v709_v45 = vld [vmem:[%s1003_s0 + $0xb8] sm:$0xff]  }
  0x32   :  { %v442_v53 = vsel %vm314_vm13, %v250_v39, %v378_v47  ;;  %505 = vst [vmem:[#allocation2 + $0xe0] sm:$0xff] %v441_v52  ;;  %vm315_vm14 = vcmp.ge.f32.partialorder %v251_v48, 0.0  ;;  %v379_v57 = vmul.f32 0.1, %v251_v48  ;;  %v183_v60 = vmul.f32 %v626_v51, %v772_v1 }
  0x33   :  { %506 = vst [vmem:[#allocation2 + $0xe8] sm:$0xff] %v442_v53  ;;  %vm316_vm15 = vcmp.ge.f32.partialorder %v252_v49, 0.0  ;;  %v380_v58 = vmul.f32 0.1, %v252_v49  ;;  %v184_v61 = vmul.f32 %v629_v54, %v772_v1  ;;  %v185_v62 = vmul.f32 %v630_v55, %v772_v1 }
  0x34   :  { %v443_v0 = vsel %vm315_vm14, %v251_v48, %v379_v57  ;;  %v633_v3 = vunpack.c.l.bf16 %v704_v56  ;;  %v634_v4 = vunpack.c.h.bf16 %v704_v56  ;;  %v253_v5 = vadd.f32 %v786_v7, %v182_v59 }
  0x35   :  { %v444_v2 = vsel %vm316_vm15, %v252_v49, %v380_v58  ;;  %507 = vst [vmem:[#allocation2 + $0xf0] sm:$0xff] %v443_v0  ;;  %v254_v6 = vadd.f32 %v786_v7, %v183_v60  ;;  %v255_v8 = vadd.f32 %v786_v7, %v184_v61  ;;  %v256_v9 = vadd.f32 %v786_v7, %v185_v62 }
  0x36   :  { %508 = vst [vmem:[#allocation2 + $0xf8] sm:$0xff] %v444_v2  ;;  %v186_v10 = vmul.f32 %v633_v3, %v772_v1  ;;  %v187_v11 = vmul.f32 %v634_v4, %v772_v1  ;;  %v637_v12 = vunpack.c.l.bf16 %v705_v63  ;;  %v638_v13 = vunpack.c.h.bf16 %v705_v63  ;;  %v710_v3 = vld [vmem:[%s1003_s0 + $0xc0] sm:$0xff]  }
  0x37   :  { %vm317_vm0 = vcmp.ge.f32.partialorder %v253_v5, 0.0  ;;  %v381_v14 = vmul.f32 0.1, %v253_v5  ;;  %vm318_vm1 = vcmp.ge.f32.partialorder %v254_v6, 0.0  ;;  %v382_v15 = vmul.f32 0.1, %v254_v6 }
  0x38   :  { %vm319_vm2 = vcmp.ge.f32.partialorder %v255_v8, 0.0  ;;  %v383_v16 = vmul.f32 0.1, %v255_v8  ;;  %vm320_vm3 = vcmp.ge.f32.partialorder %v256_v9, 0.0  ;;  %v384_v17 = vmul.f32 0.1, %v256_v9 }
  0x39   :  { %v445_v18 = vsel %vm317_vm0, %v253_v5, %v381_v14  ;;  %v446_v19 = vsel %vm318_vm1, %v254_v6, %v382_v15  ;;  %v257_v20 = vadd.f32 %v786_v7, %v186_v10  ;;  %v258_v21 = vadd.f32 %v786_v7, %v187_v11 }
  0x3a   :  { %509 = vst [vmem:[#allocation2 + $0x100] sm:$0xff] %v445_v18  ;;  %510 = vst [vmem:[#allocation2 + $0x108] sm:$0xff] %v446_v19  ;;  %v447_v23 = vsel %vm319_vm2, %v255_v8, %v383_v16  ;;  %v448_v24 = vsel %vm320_vm3, %v256_v9, %v384_v17  ;;  %v188_v25 = vmul.f32 %v637_v12, %v772_v1  ;;  %v641_v32 = vunpack.c.l.bf16 %v706_v22  ;;  %v711_v9 = vld [vmem:[%s1003_s0 + $0xc8] sm:$0xff]  }
  0x3b   :  { %v189_v26 = vmul.f32 %v638_v13, %v772_v1  ;;  %511 = vst [vmem:[#allocation2 + $0x110] sm:$0xff] %v447_v23  ;;  %512 = vst [vmem:[#allocation2 + $0x118] sm:$0xff] %v448_v24  ;;  %vm321_vm4 = vcmp.ge.f32.partialorder %v257_v20, 0.0  ;;  %v385_v28 = vmul.f32 0.1, %v257_v20  ;;  %vm322_vm5 = vcmp.ge.f32.partialorder %v258_v21, 0.0 }
  0x3c   :  { %v386_v29 = vmul.f32 0.1, %v258_v21  ;;  %v259_v30 = vadd.f32 %v786_v7, %v188_v25  ;;  %v642_v33 = vunpack.c.h.bf16 %v706_v22  ;;  %v645_v36 = vunpack.c.l.bf16 %v707_v27 }
  0x3d   :  { %v260_v31 = vadd.f32 %v786_v7, %v189_v26  ;;  %v449_v34 = vsel %vm321_vm4, %v257_v20, %v385_v28  ;;  %v646_v37 = vunpack.c.h.bf16 %v707_v27  ;;  %v190_v41 = vmul.f32 %v641_v32, %v772_v1  ;;  %v712_v20 = vld [vmem:[%s1003_s0 + $0xd0] sm:$0xff]   ;;  %v713_v27 = vld [vmem:[%s1003_s0 + $0xd8] sm:$0xff]  }
  0x3e   :  { %v450_v35 = vsel %vm322_vm5, %v258_v21, %v386_v29  ;;  %513 = vst [vmem:[#allocation2 + $0x120] sm:$0xff] %v449_v34  ;;  %vm323_vm6 = vcmp.ge.f32.partialorder %v259_v30, 0.0  ;;  %v387_v39 = vmul.f32 0.1, %v259_v30  ;;  %v191_v42 = vmul.f32 %v642_v33, %v772_v1 }
  0x3f   :  { %514 = vst [vmem:[#allocation2 + $0x128] sm:$0xff] %v450_v35  ;;  %vm324_vm7 = vcmp.ge.f32.partialorder %v260_v31, 0.0  ;;  %v388_v40 = vmul.f32 0.1, %v260_v31  ;;  %v192_v43 = vmul.f32 %v645_v36, %v772_v1  ;;  %v193_v44 = vmul.f32 %v646_v37, %v772_v1 }
  0x40   :  { %v451_v46 = vsel %vm323_vm6, %v259_v30, %v387_v39  ;;  %v649_v48 = vunpack.c.l.bf16 %v708_v38  ;;  %v650_v49 = vunpack.c.h.bf16 %v708_v38  ;;  %v261_v50 = vadd.f32 %v786_v7, %v190_v41 }
  0x41   :  { %v452_v47 = vsel %vm324_vm7, %v260_v31, %v388_v40  ;;  %515 = vst [vmem:[#allocation2 + $0x130] sm:$0xff] %v451_v46  ;;  %v262_v51 = vadd.f32 %v786_v7, %v191_v42  ;;  %v263_v52 = vadd.f32 %v786_v7, %v192_v43  ;;  %v264_v53 = vadd.f32 %v786_v7, %v193_v44 }
  0x42   :  { %516 = vst [vmem:[#allocation2 + $0x138] sm:$0xff] %v452_v47  ;;  %v194_v54 = vmul.f32 %v649_v48, %v772_v1  ;;  %v195_v55 = vmul.f32 %v650_v49, %v772_v1  ;;  %v653_v56 = vunpack.c.l.bf16 %v709_v45  ;;  %v654_v57 = vunpack.c.h.bf16 %v709_v45  ;;  %v714_v48 = vld [vmem:[%s1003_s0 + $0xe0] sm:$0xff]  }
  0x43   :  { %vm325_vm8 = vcmp.ge.f32.partialorder %v261_v50, 0.0  ;;  %v389_v58 = vmul.f32 0.1, %v261_v50  ;;  %vm326_vm9 = vcmp.ge.f32.partialorder %v262_v51, 0.0  ;;  %v390_v59 = vmul.f32 0.1, %v262_v51 }
  0x44   :  { %vm327_vm10 = vcmp.ge.f32.partialorder %v263_v52, 0.0  ;;  %v391_v60 = vmul.f32 0.1, %v263_v52  ;;  %vm328_vm11 = vcmp.ge.f32.partialorder %v264_v53, 0.0  ;;  %v392_v61 = vmul.f32 0.1, %v264_v53 }
  0x45   :  { %v453_v62 = vsel %vm325_vm8, %v261_v50, %v389_v58  ;;  %v454_v63 = vsel %vm326_vm9, %v262_v51, %v390_v59  ;;  %v265_v0 = vadd.f32 %v786_v7, %v194_v54  ;;  %v266_v2 = vadd.f32 %v786_v7, %v195_v55 }
  0x46   :  { %517 = vst [vmem:[#allocation2 + $0x140] sm:$0xff] %v453_v62  ;;  %518 = vst [vmem:[#allocation2 + $0x148] sm:$0xff] %v454_v63  ;;  %v455_v4 = vsel %vm327_vm10, %v263_v52, %v391_v60  ;;  %v456_v5 = vsel %vm328_vm11, %v264_v53, %v392_v61  ;;  %v196_v6 = vmul.f32 %v653_v56, %v772_v1  ;;  %v657_v14 = vunpack.c.l.bf16 %v710_v3  ;;  %v715_v53 = vld [vmem:[%s1003_s0 + $0xe8] sm:$0xff]  }
  0x47   :  { %v197_v8 = vmul.f32 %v654_v57, %v772_v1  ;;  %519 = vst [vmem:[#allocation2 + $0x150] sm:$0xff] %v455_v4  ;;  %520 = vst [vmem:[#allocation2 + $0x158] sm:$0xff] %v456_v5  ;;  %vm329_vm12 = vcmp.ge.f32.partialorder %v265_v0, 0.0  ;;  %v393_v10 = vmul.f32 0.1, %v265_v0  ;;  %vm330_vm13 = vcmp.ge.f32.partialorder %v266_v2, 0.0 }
  0x48   :  { %v394_v11 = vmul.f32 0.1, %v266_v2  ;;  %v267_v12 = vadd.f32 %v786_v7, %v196_v6  ;;  %v658_v15 = vunpack.c.h.bf16 %v710_v3  ;;  %v661_v18 = vunpack.c.l.bf16 %v711_v9 }
  0x49   :  { %v268_v13 = vadd.f32 %v786_v7, %v197_v8  ;;  %v457_v16 = vsel %vm329_vm12, %v265_v0, %v393_v10  ;;  %v662_v19 = vunpack.c.h.bf16 %v711_v9  ;;  %v198_v23 = vmul.f32 %v657_v14, %v772_v1  ;;  %v716_v0 = vld [vmem:[%s1003_s0 + $0xf0] sm:$0xff]   ;;  %v717_v9 = vld [vmem:[%s1003_s0 + $0xf8] sm:$0xff]   ;;  %s743_s0 = smov [#allocation2]  }
  0x4a   :  { %v458_v17 = vsel %vm330_vm13, %v266_v2, %v394_v11  ;;  %521 = vst [vmem:[#allocation2 + $0x160] sm:$0xff] %v457_v16  ;;  %vm331_vm14 = vcmp.ge.f32.partialorder %v267_v12, 0.0  ;;  %v395_v21 = vmul.f32 0.1, %v267_v12  ;;  %v199_v24 = vmul.f32 %v658_v15, %v772_v1  ;;  %s546_s22 = sshll.u32 %s743_s0, 4  ;;  %s547_s22 = int_to_ptr.vmem [resolvable:$true] %s546_s22 }
  0x4b   :  { %522 = vst [vmem:[#allocation2 + $0x168] sm:$0xff] %v458_v17  ;;  %vm332_vm15 = vcmp.ge.f32.partialorder %v268_v13, 0.0  ;;  %v396_v22 = vmul.f32 0.1, %v268_v13  ;;  %v200_v25 = vmul.f32 %v661_v18, %v772_v1  ;;  %v201_v26 = vmul.f32 %v662_v19, %v772_v1  ;;  %s721_s23 = scalar_lea.vmem %s547_s22, 8192  ;;  %p726_p1 = scmp.lt.s32.totalorder %s547_s22, %s547_s22 }
  0x4c   :  { %v459_v28 = vsel %vm331_vm14, %v267_v12, %v395_v21  ;;  %v665_v30 = vunpack.c.l.bf16 %v712_v20  ;;  %v666_v31 = vunpack.c.h.bf16 %v712_v20  ;;  %v269_v32 = vadd.f32 %v786_v7, %v198_v23  ;;  %p722_p0 = scmp.ne.s32.totalorder %s547_s22, %s721_s23  ;;  %p727_p2 = scmp.lt.s32.totalorder %s721_s23, %s721_s23 }
  0x4d   :  { %v460_v29 = vsel %vm332_vm15, %v268_v13, %v396_v22  ;;  %523 = vst [vmem:[#allocation2 + $0x170] sm:$0xff] %v459_v28  ;;  %v270_v33 = vadd.f32 %v786_v7, %v199_v24  ;;  %v271_v34 = vadd.f32 %v786_v7, %v200_v25  ;;  %v272_v35 = vadd.f32 %v786_v7, %v201_v26 }
  0x4e   :  { %524 = vst [vmem:[#allocation2 + $0x178] sm:$0xff] %v460_v29  ;;  %v202_v36 = vmul.f32 %v665_v30, %v772_v1  ;;  %v203_v37 = vmul.f32 %v666_v31, %v772_v1  ;;  %v669_v38 = vunpack.c.l.bf16 %v713_v27  ;;  %v670_v39 = vunpack.c.h.bf16 %v713_v27  ;;  %p728_p3 = por %p727_p2, %p726_p1 }
  0x4f   :  { %vm333_vm0 = vcmp.ge.f32.partialorder %v269_v32, 0.0  ;;  %v397_v40 = vmul.f32 0.1, %v269_v32  ;;  %vm334_vm1 = vcmp.ge.f32.partialorder %v270_v33, 0.0  ;;  %v398_v41 = vmul.f32 0.1, %v270_v33 }
  0x50   :  { %vm335_vm2 = vcmp.ge.f32.partialorder %v271_v34, 0.0  ;;  %v399_v42 = vmul.f32 0.1, %v271_v34  ;;  %vm336_vm3 = vcmp.ge.f32.partialorder %v272_v35, 0.0  ;;  %v400_v43 = vmul.f32 0.1, %v272_v35  ;;  %p729_p4 = pnand %p728_p3, %p722_p0 }
  0x51   :  { %v461_v44 = vsel %vm333_vm0, %v269_v32, %v397_v40  ;;  %v462_v45 = vsel %vm334_vm1, %v270_v33, %v398_v41  ;;  %v273_v46 = vadd.f32 %v786_v7, %v202_v36  ;;  %v274_v47 = vadd.f32 %v786_v7, %v203_v37 }
  0x52   :  { %525 = vst [vmem:[#allocation2 + $0x180] sm:$0xff] %v461_v44  ;;  %526 = vst [vmem:[#allocation2 + $0x188] sm:$0xff] %v462_v45  ;;  %v463_v49 = vsel %vm335_vm2, %v271_v34, %v399_v42  ;;  %v464_v50 = vsel %vm336_vm3, %v272_v35, %v400_v43  ;;  %v204_v51 = vmul.f32 %v669_v38, %v772_v1  ;;  %v673_v58 = vunpack.c.l.bf16 %v714_v48 }
  0x53   :  { %v205_v52 = vmul.f32 %v670_v39, %v772_v1  ;;  %527 = vst [vmem:[#allocation2 + $0x190] sm:$0xff] %v463_v49  ;;  %528 = vst [vmem:[#allocation2 + $0x198] sm:$0xff] %v464_v50  ;;  %vm337_vm4 = vcmp.ge.f32.partialorder %v273_v46, 0.0  ;;  %v401_v54 = vmul.f32 0.1, %v273_v46  ;;  %vm338_vm5 = vcmp.ge.f32.partialorder %v274_v47, 0.0 }
  0x54   :  { %v402_v55 = vmul.f32 0.1, %v274_v47  ;;  %v275_v56 = vadd.f32 %v786_v7, %v204_v51  ;;  %v674_v59 = vunpack.c.h.bf16 %v714_v48  ;;  %v677_v62 = vunpack.c.l.bf16 %v715_v53 }
  0x55   :  { %v276_v57 = vadd.f32 %v786_v7, %v205_v52  ;;  %v465_v60 = vsel %vm337_vm4, %v273_v46, %v401_v54  ;;  %v678_v63 = vunpack.c.h.bf16 %v715_v53  ;;  %v206_v4 = vmul.f32 %v673_v58, %v772_v1 }
  0x56   :  { %v466_v61 = vsel %vm338_vm5, %v274_v47, %v402_v55  ;;  %529 = vst [vmem:[#allocation2 + $0x1a0] sm:$0xff] %v465_v60  ;;  %vm339_vm6 = vcmp.ge.f32.partialorder %v275_v56, 0.0  ;;  %v403_v2 = vmul.f32 0.1, %v275_v56  ;;  %v207_v5 = vmul.f32 %v674_v59, %v772_v1 }
  0x57   :  { %530 = vst [vmem:[#allocation2 + $0x1a8] sm:$0xff] %v466_v61  ;;  %vm340_vm7 = vcmp.ge.f32.partialorder %v276_v57, 0.0  ;;  %v404_v3 = vmul.f32 0.1, %v276_v57  ;;  %v208_v6 = vmul.f32 %v677_v62, %v772_v1  ;;  %v209_v8 = vmul.f32 %v678_v63, %v772_v1 }
  0x58   :  { %v467_v10 = vsel %vm339_vm6, %v275_v56, %v403_v2  ;;  %v681_v12 = vunpack.c.l.bf16 %v716_v0  ;;  %v682_v13 = vunpack.c.h.bf16 %v716_v0  ;;  %v277_v14 = vadd.f32 %v786_v7, %v206_v4 }
  0x59   :  { %v468_v11 = vsel %vm340_vm7, %v276_v57, %v404_v3  ;;  %531 = vst [vmem:[#allocation2 + $0x1b0] sm:$0xff] %v467_v10  ;;  %v278_v15 = vadd.f32 %v786_v7, %v207_v5  ;;  %v279_v16 = vadd.f32 %v786_v7, %v208_v6  ;;  %v280_v17 = vadd.f32 %v786_v7, %v209_v8 }
  0x5a   :  { %532 = vst [vmem:[#allocation2 + $0x1b8] sm:$0xff] %v468_v11  ;;  %v210_v18 = vmul.f32 %v681_v12, %v772_v1  ;;  %v211_v19 = vmul.f32 %v682_v13, %v772_v1  ;;  %v685_v20 = vunpack.c.l.bf16 %v717_v9  ;;  %v686_v21 = vunpack.c.h.bf16 %v717_v9 }
  0x5b   :  { %vm341_vm8 = vcmp.ge.f32.partialorder %v277_v14, 0.0  ;;  %v405_v22 = vmul.f32 0.1, %v277_v14  ;;  %vm342_vm9 = vcmp.ge.f32.partialorder %v278_v15, 0.0  ;;  %v406_v23 = vmul.f32 0.1, %v278_v15 }
  0x5c   :  { %vm343_vm10 = vcmp.ge.f32.partialorder %v279_v16, 0.0  ;;  %v407_v24 = vmul.f32 0.1, %v279_v16  ;;  %vm344_vm11 = vcmp.ge.f32.partialorder %v280_v17, 0.0  ;;  %v408_v25 = vmul.f32 0.1, %v280_v17 }
  0x5d   :  { %v469_v26 = vsel %vm341_vm8, %v277_v14, %v405_v22  ;;  %v470_v27 = vsel %vm342_vm9, %v278_v15, %v406_v23  ;;  %v281_v28 = vadd.f32 %v786_v7, %v210_v18  ;;  %v282_v29 = vadd.f32 %v786_v7, %v211_v19 }
  0x5e   :  { %533 = vst [vmem:[#allocation2 + $0x1c0] sm:$0xff] %v469_v26  ;;  %534 = vst [vmem:[#allocation2 + $0x1c8] sm:$0xff] %v470_v27  ;;  %v471_v30 = vsel %vm343_vm10, %v279_v16, %v407_v24  ;;  %v472_v31 = vsel %vm344_vm11, %v280_v17, %v408_v25  ;;  %v212_v32 = vmul.f32 %v685_v20, %v772_v1 }
  0x5f   :  { %v213_v33 = vmul.f32 %v686_v21, %v772_v1  ;;  %535 = vst [vmem:[#allocation2 + $0x1d0] sm:$0xff] %v471_v30  ;;  %536 = vst [vmem:[#allocation2 + $0x1d8] sm:$0xff] %v472_v31  ;;  %vm345_vm12 = vcmp.ge.f32.partialorder %v281_v28, 0.0  ;;  %v409_v34 = vmul.f32 0.1, %v281_v28  ;;  %vm346_vm13 = vcmp.ge.f32.partialorder %v282_v29, 0.0 }
  0x60   :  { %v410_v35 = vmul.f32 0.1, %v282_v29  ;;  %v283_v36 = vadd.f32 %v786_v7, %v212_v32 }
  0x61   :  { %v284_v37 = vadd.f32 %v786_v7, %v213_v33  ;;  %v473_v38 = vsel %vm345_vm12, %v281_v28, %v409_v34 }
  0x62   :  { %v474_v39 = vsel %vm346_vm13, %v282_v29, %v410_v35  ;;  %537 = vst [vmem:[#allocation2 + $0x1e0] sm:$0xff] %v473_v38  ;;  %vm347_vm14 = vcmp.ge.f32.partialorder %v283_v36, 0.0  ;;  %v411_v40 = vmul.f32 0.1, %v283_v36 }
  0x63   :  { %538 = vst [vmem:[#allocation2 + $0x1e8] sm:$0xff] %v474_v39  ;;  %vm348_vm15 = vcmp.ge.f32.partialorder %v284_v37, 0.0  ;;  %v412_v1 = vmul.f32 0.1, %v284_v37 }
  0x64   :  { %v475_v41 = vsel %vm347_vm14, %v283_v36, %v411_v40 }
  0x65   :  { %v476_v42 = vsel %vm348_vm15, %v284_v37, %v412_v1  ;;  %539 = vst [vmem:[#allocation2 + $0x1f0] sm:$0xff] %v475_v41 }
  0x66   :  { %540 = vst [vmem:[#allocation2 + $0x1f8] sm:$0xff] %v476_v42 }
  0x67   :  { %732 = shalt.err (!%p729_p4)
}
  0x68   :  { %s744_s1 = smov 128   ;;  %s745_s2 = smov 8  }
  0x69   :  { %552 = dma.vmem_to_hbm [thread:$0]  %s547_s22, 8192, %s1006_s3, [#allocation3], %s744_s1, %s744_s1, %s745_s2  }
  0x6a   :  { %741 = dma.done.wait [#allocation3], 8192  }
  0x6b   :  { %742 = vsyncadd [#allocation3], 4294959104 }
  0x6c   :  { %556 = vsyncpa [#allocation3], 1 }

// kernel: run.2
= control target key start
LH: loop header
LB: loop body
LE: loop exit
PB: predicated region body
PF: predicated region fallthrough
CT: control target
= control target key end

     0   :  { %s1661_s15 = smov 0   ;;  %s1663_s16 = smov 0   ;;  %s1862_s0 = inlined_call_operand.vmem [shape: bf16[512,128], index: 0, kind: input, shape index: {}]   ;;  %s1863_s1 = inlined_call_operand.vmem [shape: bf16[128,128], index: 1, kind: input, shape index: {}]   ;;  %s1864_s2 = inlined_call_operand.vmem [shape: bf16[512,128], index: 2, kind: output, shape index: {0}]   ;;  %s1865_s3 = inlined_call_operand.vmem [shape: f32[2,8,128], index: 3, kind: output, shape index: {1}]   ;;  %s1866_s4 = inlined_call_operand.vmem [shape: f32[2,8,128], index: 4, kind: output, shape index: {2}]  }
   0x1   :  { %s1665_s17 = smov 0  }
   0x2 LB: > { %s34_s18 = sadd.s32 1, %s1630_s16  ;;  %p1284_p0 = scmp.ge.s32.totalorder %s1634_s17, 1  ;;  %s1634_s17 = sphi %s1665_s17, %s15_s17   ;;  %s1630_s16 = sphi %s1663_s16, %s1868_s16   ;;  %s1626_s15 = sphi %s1661_s15, %s1867_s15  }
   0x3   : > { %p36_p1 = scmp.ge.s32.totalorder %s34_s18, 2  ;;  %p214_p2 = scmp.lt.s32.totalorder %s1634_s17, 3 }
   0x5   : > { %s1870_s18 = smov (%p36_p1, %s34_s18), 0  ;;  %p215_p3 = pnand %p1284_p0, %p214_p2 }
   0x6   : > { %s1285_s21 = sshll.u32 (!%p215_p3), %s1626_s15, 5  ;;  %p295_p5 = scmp.lt.s32.totalorder (!%p215_p3), %s1626_s15, 1 }
   0x7   : > { %218 = sbr.rel (%p215_p3) target bundleno = 321 (0x141), region = 28  ;;  %p269_p4 = scmp.lt.s32.totalorder (!%p215_p3), %s1285_s21, 63 }
   0xc   : > { %v1588_v0 = vld [vmem:[%s1863_s1 + $0x38] sm:$0xff]   ;;  %v1589_v1 = vld [vmem:[%s1863_s1 + $0x30] sm:$0xff]   ;;  %s1872_s21 = smov (!%p269_p4, %s1285_s21), 63  ;;  %v1590_v2 = vld [vmem:[%s1863_s1 + $0x28] sm:$0xff]   ;;  %s1874_s15 = smov (!%p295_p5, %s1626_s15), 1 }
   0xd   : > { %1500 = vmatprep.subr.bf16.mxu0 %v1588_v0  ;;  %1548 = vmatprep.subr.bf16.mxu1 %v1588_v0  ;;  %s1286_s26 = sshll.u32 %s1872_s21, 2  ;;  %v1591_v3 = vld [vmem:[%s1863_s1 + $0x20] sm:$0xff]   ;;  %v1592_v5 = vld [vmem:[%s1863_s1 + $0x18] sm:$0xff]   ;;  %v1593_v6 = vld [vmem:[%s1863_s1 + $0x10] sm:$0xff]   ;;  %s1289_s21 = sshll.u32 %s1874_s15, 3 }
   0xe   : > { %1501 = vmatpush3.bf16.msra.mxu0 %v1588_v0  ;;  %1556 = vmatpush3.bf16.msra.mxu1 %v1588_v0  ;;  %s1699_s29 = scalar_lea.vmem %s1862_s0, %s1286_s26  ;;  %v1594_v8 = vld [vmem:[%s1863_s1 + $0x8] sm:$0xff]   ;;  %v1595_v9 = vld [vmem:[%s1863_s1] sm:$0xff]   ;;  %s1741_s20 = scalar_lea.vmem %s1864_s2, %s1286_s26 }
   0xf   : > { %1502 = vmatprep.subr.bf16.mxu0 %v1589_v1  ;;  %1549 = vmatprep.subr.bf16.mxu1 %v1589_v1  ;;  %v1596_v4 = vld [vmem:[%s1699_s29] sm:$0xff]   ;;  %v1597_v10 = vld [vmem:[%s1699_s29 + $0x8] sm:$0xff]   ;;  %v1598_v12 = vld [vmem:[%s1699_s29 + $0x10] sm:$0xff]   ;;  %s301_s24 = scalar_lea.vmem %s1865_s3, %s1289_s21  ;;  %s308_s27 = scalar_lea.vmem %s1866_s4, %s1289_s21 }
  0x10   : > { %1516 = vmatprep.mubr.bf16.mxu0 %v1596_v4  ;;  %v1604_v7 = vld [vmem:[%s1699_s29 + $0x40] sm:$0xff]   ;;  %v1605_v11 = vld [vmem:[%s1699_s29 + $0x48] sm:$0xff]   ;;  %v1606_v13 = vld [vmem:[%s1699_s29 + $0x50] sm:$0xff]  }
  0x11   : > { %1532 = vmatprep.mubr.bf16.mxu1 %v1604_v7  ;;  %v1599_v14 = vld [vmem:[%s1699_s29 + $0x18] sm:$0xff]   ;;  %v1600_v16 = vld [vmem:[%s1699_s29 + $0x20] sm:$0xff]   ;;  %v1601_v18 = vld [vmem:[%s1699_s29 + $0x28] sm:$0xff]  }
  0x12   : > { %1503 = vmatpush3.bf16.msra.mxu0 %v1589_v1  ;;  %1557 = vmatpush3.bf16.msra.mxu1 %v1589_v1  ;;  %v1607_v15 = vld [vmem:[%s1699_s29 + $0x58] sm:$0xff]   ;;  %v1608_v17 = vld [vmem:[%s1699_s29 + $0x60] sm:$0xff]   ;;  %v1609_v19 = vld [vmem:[%s1699_s29 + $0x68] sm:$0xff]  }
  0x13   : > { %1504 = vmatprep.subr.bf16.mxu0 %v1590_v2  ;;  %1550 = vmatprep.subr.bf16.mxu1 %v1590_v2  ;;  %v1602_v20 = vld [vmem:[%s1699_s29 + $0x30] sm:$0xff]   ;;  %v1603_v22 = vld [vmem:[%s1699_s29 + $0x38] sm:$0xff]  }
  0x14   : > { %v1610_v21 = vld [vmem:[%s1699_s29 + $0x70] sm:$0xff]   ;;  %v1611_v23 = vld [vmem:[%s1699_s29 + $0x78] sm:$0xff]  }
  0x16   : > { %1505 = vmatpush3.bf16.msra.mxu0 %v1590_v2  ;;  %1558 = vmatpush3.bf16.msra.mxu1 %v1590_v2 }
  0x17   : > { %1506 = vmatprep.subr.bf16.mxu0 %v1591_v3  ;;  %1551 = vmatprep.subr.bf16.mxu1 %v1591_v3 }
  0x1a   : > { %1507 = vmatpush3.bf16.msra.mxu0 %v1591_v3  ;;  %1559 = vmatpush3.bf16.msra.mxu1 %v1591_v3 }
  0x1b   : > { %1508 = vmatprep.subr.bf16.mxu0 %v1592_v5  ;;  %1552 = vmatprep.subr.bf16.mxu1 %v1592_v5 }
  0x1e   : > { %1509 = vmatpush3.bf16.msra.mxu0 %v1592_v5  ;;  %1560 = vmatpush3.bf16.msra.mxu1 %v1592_v5 }
  0x1f   : > { %1510 = vmatprep.subr.bf16.mxu0 %v1593_v6  ;;  %1553 = vmatprep.subr.bf16.mxu1 %v1593_v6 }
  0x22   : > { %1511 = vmatpush3.bf16.msra.mxu0 %v1593_v6  ;;  %1561 = vmatpush3.bf16.msra.mxu1 %v1593_v6 }
  0x23   : > { %1512 = vmatprep.subr.bf16.mxu0 %v1594_v8  ;;  %1554 = vmatprep.subr.bf16.mxu1 %v1594_v8 }
  0x26   : > { %1513 = vmatpush3.bf16.msra.mxu0 %v1594_v8  ;;  %1562 = vmatpush3.bf16.msra.mxu1 %v1594_v8 }
  0x27   : > { %1514 = vmatprep.subr.bf16.mxu0 %v1595_v9  ;;  %1555 = vmatprep.subr.bf16.mxu1 %v1595_v9 }
  0x2a   : > { %1515 = vmatpush3.bf16.msra.mxu0 %v1595_v9  ;;  %1563 = vmatpush3.bf16.msra.mxu1 %v1595_v9 }
  0x2d   : > { %1517 = vmatmul.mubr.bf16.vlgmr.msra.gmra.mxu0 %v1597_v10  ;;  %1533 = vmatmul.mubr.bf16.vlgmr.msra.gmra.mxu1 %v1605_v11 }
  0x2e   : > { %1520 = vmatprep.mubr.bf16.mxu0 %v1598_v12  ;;  %1536 = vmatprep.mubr.bf16.mxu1 %v1606_v13 }
  0x35   : > { %1521 = vmatmul.mubr.bf16.gmra.mxu0 %v1599_v14  ;;  %1537 = vmatmul.mubr.bf16.gmra.mxu1 %v1607_v15 }
  0x36   : > { %1524 = vmatprep.mubr.bf16.mxu0 %v1600_v16  ;;  %1540 = vmatprep.mubr.bf16.mxu1 %v1608_v17 }
  0x3d   : > { %1525 = vmatmul.mubr.bf16.gmra.mxu0 %v1601_v18  ;;  %1541 = vmatmul.mubr.bf16.gmra.mxu1 %v1609_v19 }
  0x3e   : > { %1528 = vmatprep.mubr.bf16.mxu0 %v1602_v20  ;;  %1544 = vmatprep.mubr.bf16.mxu1 %v1610_v21 }
  0x45   : > { %1529 = vmatmul.mubr.bf16.gmra.mxu0 %v1603_v22  ;;  %1545 = vmatmul.mubr.bf16.gmra.mxu1 %v1611_v23 }
  0xed   : > { %v1518_v24 = vpop.f32.mrf.mxu0  ;;  %v1732_v25 = vpop.f32.mrf.mxu1 }
  0xee   : > { %v1029_v41 = vmul.f32 %v1518_v24, %v1518_v24 }
  0xef   : > { %v604_v26 = vpop.f32.mrf.mxu0  ;;  %v1734_v27 = vpop.f32.mrf.mxu1 }
  0xf0   : > { %v1027_v32 = vmul.f32 %v604_v26, %v604_v26 }
  0xf1   : > { %v1519_v28 = vpop.f32.mrf.mxu0  ;;  %v1743_v29 = vpop.f32.mrf.mxu1 }
  0xf2   : > { %v1389_v30 = vpack.c.bf16 %v1519_v28, %v1518_v24  ;;  %v1429_v31 = vpack.c.bf16 %v1743_v29, %v1732_v25  ;;  %v1030_v46 = vmul.f32 %v1519_v28, %v1519_v28 }
  0xf3   : > { %v607_v33 = vpop.f32.mrf.mxu0  ;;  %v1747_v34 = vpop.f32.mrf.mxu1 }
  0xf4   : > { %1461 = vst [vmem:[%s1741_s20 + $0x8] sm:$0xff] %v1389_v30   ;;  %v1384_v35 = vpack.c.bf16 %v607_v33, %v604_v26  ;;  %v990_v36 = vadd.f32 %v607_v33, %v604_v26  ;;  %v1028_v37 = vmul.f32 %v607_v33, %v607_v33  ;;  %1469 = vst [vmem:[%s1741_s20 + $0x48] sm:$0xff] %v1429_v31  }
  0xf5   : > { %v1424_v38 = vpack.c.bf16 %v1747_v34, %v1734_v27  ;;  %v1522_v39 = vpop.f32.mrf.mxu0  ;;  %v1753_v40 = vpop.f32.mrf.mxu1 }
  0xf6   : > { %1385 = vst [vmem:[%s1741_s20] sm:$0xff] %v1384_v35   ;;  %v991_v42 = vadd.f32 %v1518_v24, %v990_v36  ;;  %v1059_v43 = vadd.f32 %v1028_v37, %v1027_v32  ;;  %v1033_v1 = vmul.f32 %v1522_v39, %v1522_v39 }
  0xf7   : > { %1468 = vst [vmem:[%s1741_s20 + $0x40] sm:$0xff] %v1424_v38   ;;  %v620_v44 = vpop.f32.mrf.mxu0  ;;  %v1757_v45 = vpop.f32.mrf.mxu1 }
  0xf8   : > { %v1060_v47 = vadd.f32 %v1059_v43, %v1029_v41  ;;  %v992_v48 = vadd.f32 %v1519_v28, %v991_v42  ;;  %v1031_v52 = vmul.f32 %v620_v44, %v620_v44 }
  0xf9   : > { %v1523_v49 = vpop.f32.mrf.mxu0  ;;  %v1759_v50 = vpop.f32.mrf.mxu1 }
  0xfa   : > { %v993_v51 = vadd.f32 %v992_v48, %v620_v44  ;;  %v1061_v53 = vadd.f32 %v1060_v47, %v1030_v46  ;;  %v1399_v54 = vpack.c.bf16 %v1523_v49, %v1522_v39  ;;  %v1439_v56 = vpack.c.bf16 %v1759_v50, %v1753_v40 }
  0xfb   : > { %v623_v55 = vpop.f32.mrf.mxu0  ;;  %v1763_v57 = vpop.f32.mrf.mxu1  ;;  %v1034_v6 = vmul.f32 %v1523_v49, %v1523_v49 }
  0xfc   : > { %v1062_v58 = vadd.f32 %v1061_v53, %v1031_v52  ;;  %1463 = vst [vmem:[%s1741_s20 + $0x18] sm:$0xff] %v1399_v54   ;;  %v1394_v59 = vpack.c.bf16 %v623_v55, %v620_v44  ;;  %v994_v60 = vadd.f32 %v993_v51, %v623_v55  ;;  %v1032_v61 = vmul.f32 %v623_v55, %v623_v55 }
  0xfd   : > { %v1526_v62 = vpop.f32.mrf.mxu0  ;;  %1471 = vst [vmem:[%s1741_s20 + $0x58] sm:$0xff] %v1439_v56   ;;  %v1434_v63 = vpack.c.bf16 %v1763_v57, %v1757_v45  ;;  %v1769_v0 = vpop.f32.mrf.mxu1 }
  0xfe   : > { %1462 = vst [vmem:[%s1741_s20 + $0x10] sm:$0xff] %v1394_v59   ;;  %v995_v2 = vadd.f32 %v1522_v39, %v994_v60  ;;  %v1063_v3 = vadd.f32 %v1062_v58, %v1032_v61  ;;  %v1037_v26 = vmul.f32 %v1526_v62, %v1526_v62  ;;  %v1043_v61 = vmul.f32 %v1734_v27, %v1734_v27 }
  0xff   : > { %v636_v4 = vpop.f32.mrf.mxu0  ;;  %1470 = vst [vmem:[%s1741_s20 + $0x50] sm:$0xff] %v1434_v63   ;;  %v1773_v5 = vpop.f32.mrf.mxu1 }
 0x100   : > { %v1064_v7 = vadd.f32 %v1063_v3, %v1033_v1  ;;  %v996_v8 = vadd.f32 %v1523_v49, %v995_v2  ;;  %v1035_v12 = vmul.f32 %v636_v4, %v636_v4  ;;  %v1044_v2 = vmul.f32 %v1747_v34, %v1747_v34 }
 0x101   : > { %v1527_v9 = vpop.f32.mrf.mxu0  ;;  %v1775_v10 = vpop.f32.mrf.mxu1 }
 0x102   : > { %v997_v11 = vadd.f32 %v996_v8, %v636_v4  ;;  %v1065_v13 = vadd.f32 %v1064_v7, %v1034_v6  ;;  %v1409_v14 = vpack.c.bf16 %v1527_v9, %v1526_v62  ;;  %v1449_v16 = vpack.c.bf16 %v1775_v10, %v1769_v0 }
 0x103   : > { %v639_v15 = vpop.f32.mrf.mxu0  ;;  %v1779_v17 = vpop.f32.mrf.mxu1  ;;  %v1038_v33 = vmul.f32 %v1527_v9, %v1527_v9  ;;  %v1046_v8 = vmul.f32 %v1743_v29, %v1743_v29 }
 0x104   : > { %v1066_v18 = vadd.f32 %v1065_v13, %v1035_v12  ;;  %1465 = vst [vmem:[%s1741_s20 + $0x28] sm:$0xff] %v1409_v14   ;;  %v1404_v19 = vpack.c.bf16 %v639_v15, %v636_v4  ;;  %v998_v20 = vadd.f32 %v997_v11, %v639_v15  ;;  %v1036_v21 = vmul.f32 %v639_v15, %v639_v15 }
 0x105   : > { %v1530_v22 = vpop.f32.mrf.mxu0  ;;  %1473 = vst [vmem:[%s1741_s20 + $0x68] sm:$0xff] %v1449_v16   ;;  %v1444_v23 = vpack.c.bf16 %v1779_v17, %v1773_v5  ;;  %v1785_v24 = vpop.f32.mrf.mxu1  ;;  %v1045_v4 = vmul.f32 %v1732_v25, %v1732_v25  ;;  %v1047_v12 = vmul.f32 %v1757_v45, %v1757_v45  ;;  %v1048_v15 = vmul.f32 %v1763_v57, %v1763_v57 }
 0x106   : > { %1464 = vst [vmem:[%s1741_s20 + $0x20] sm:$0xff] %v1404_v19   ;;  %v999_v28 = vadd.f32 %v1526_v62, %v998_v20  ;;  %v1067_v30 = vadd.f32 %v1066_v18, %v1036_v21  ;;  %v1041_v54 = vmul.f32 %v1530_v22, %v1530_v22  ;;  %v1051_v21 = vmul.f32 %v1773_v5, %v1773_v5 }
 0x107   : > { %v652_v31 = vpop.f32.mrf.mxu0  ;;  %1472 = vst [vmem:[%s1741_s20 + $0x60] sm:$0xff] %v1444_v23   ;;  %v1789_v32 = vpop.f32.mrf.mxu1 }
 0x108   : > { %v1068_v35 = vadd.f32 %v1067_v30, %v1037_v26  ;;  %v1000_v36 = vadd.f32 %v1527_v9, %v999_v28  ;;  %v1039_v41 = vmul.f32 %v652_v31, %v652_v31  ;;  %v1052_v26 = vmul.f32 %v1779_v17, %v1779_v17 }
 0x109   : > { %v1531_v37 = vpop.f32.mrf.mxu0  ;;  %v1791_v38 = vpop.f32.mrf.mxu1 }
 0x10a   : > { %v1001_v39 = vadd.f32 %v1000_v36, %v652_v31  ;;  %v1069_v42 = vadd.f32 %v1068_v35, %v1038_v33  ;;  %v1419_v43 = vpack.c.bf16 %v1531_v37, %v1530_v22  ;;  %v1459_v46 = vpack.c.bf16 %v1791_v38, %v1785_v24 }
 0x10b   : > { %v655_v44 = vpop.f32.mrf.mxu0  ;;  %v719_v47 = vpop.f32.mrf.mxu1  ;;  %v1042_v58 = vmul.f32 %v1531_v37, %v1531_v37  ;;  %v1055_v35 = vmul.f32 %v1789_v32, %v1789_v32 }
 0x10c   : > { %v1070_v48 = vadd.f32 %v1069_v42, %v1039_v41  ;;  %1467 = vst [vmem:[%s1741_s20 + $0x38] sm:$0xff] %v1419_v43   ;;  %v1414_v49 = vpack.c.bf16 %v655_v44, %v652_v31  ;;  %v1002_v51 = vadd.f32 %v1001_v39, %v655_v44  ;;  %v1040_v52 = vmul.f32 %v655_v44, %v655_v44 }
 0x10d   : > { %1475 = vst [vmem:[%s1741_s20 + $0x78] sm:$0xff] %v1459_v46   ;;  %v1454_v53 = vpack.c.bf16 %v719_v47, %v1789_v32  ;;  %v1056_v39 = vmul.f32 %v719_v47, %v719_v47  ;;  %v1058_v43 = vmul.f32 %v1791_v38, %v1791_v38 }
 0x10e   : > { %1466 = vst [vmem:[%s1741_s20 + $0x30] sm:$0xff] %v1414_v49   ;;  %v1003_v55 = vadd.f32 %v1530_v22, %v1002_v51  ;;  %v1071_v56 = vadd.f32 %v1070_v48, %v1040_v52 }
 0x10f   : > { %1474 = vst [vmem:[%s1741_s20 + $0x70] sm:$0xff] %v1454_v53  }
 0x110   : > { %v1004_v59 = vadd.f32 %v1531_v37, %v1003_v55  ;;  %v1072_v60 = vadd.f32 %v1071_v56, %v1041_v54 }
 0x112   : > { %v1073_v62 = vadd.f32 %v1072_v60, %v1042_v58  ;;  %v1005_v63 = vadd.f32 %v1004_v59, %v1734_v27 }
 0x114   : > { %v1006_v1 = vadd.f32 %v1005_v63, %v1747_v34  ;;  %v1074_v3 = vadd.f32 %v1073_v62, %v1043_v61 }
 0x116   : > { %v1007_v6 = vadd.f32 %v1732_v25, %v1006_v1  ;;  %v1075_v7 = vadd.f32 %v1074_v3, %v1044_v2  ;;  %v1049_v25 = vmul.f32 %v1753_v40, %v1753_v40 }
 0x118   : > { %v1076_v9 = vadd.f32 %v1075_v7, %v1045_v4  ;;  %v1008_v11 = vadd.f32 %v1743_v29, %v1007_v6  ;;  %v1050_v29 = vmul.f32 %v1759_v50, %v1759_v50 }
 0x11a   : > { %v1009_v27 = vadd.f32 %v1008_v11, %v1757_v45  ;;  %v1077_v13 = vadd.f32 %v1076_v9, %v1046_v8 }
 0x11c   : > { %v1078_v34 = vadd.f32 %v1077_v13, %v1047_v12  ;;  %v1010_v14 = vadd.f32 %v1009_v27, %v1763_v57 }
 0x11e   : > { %v1011_v16 = vadd.f32 %v1753_v40, %v1010_v14  ;;  %v1079_v18 = vadd.f32 %v1078_v34, %v1048_v15  ;;  %v1053_v40 = vmul.f32 %v1769_v0, %v1769_v0 }
 0x120   : > { %v1080_v19 = vadd.f32 %v1079_v18, %v1049_v25  ;;  %v1012_v20 = vadd.f32 %v1759_v50, %v1011_v16  ;;  %v1054_v50 = vmul.f32 %v1775_v10, %v1775_v10 }
 0x122   : > { %v1013_v45 = vadd.f32 %v1012_v20, %v1773_v5  ;;  %v1081_v22 = vadd.f32 %v1080_v19, %v1050_v29 }
 0x124   : > { %v1082_v23 = vadd.f32 %v1081_v22, %v1051_v21  ;;  %v1014_v57 = vadd.f32 %v1013_v45, %v1779_v17 }
 0x126   : > { %v1015_v28 = vadd.f32 %v1769_v0, %v1014_v57  ;;  %v1083_v30 = vadd.f32 %v1082_v23, %v1052_v26  ;;  %v1057_v0 = vmul.f32 %v1785_v24, %v1785_v24 }
 0x128   : > { %v1084_v31 = vadd.f32 %v1083_v30, %v1053_v40  ;;  %v1016_v5 = vadd.f32 %v1775_v10, %v1015_v28 }
 0x12a   : > { %v1017_v33 = vadd.f32 %v1016_v5, %v1789_v32  ;;  %v1085_v17 = vadd.f32 %v1084_v31, %v1054_v50 }
 0x12c   : > { %v1086_v36 = vadd.f32 %v1085_v17, %v1055_v35  ;;  %v1018_v37 = vadd.f32 %v1017_v33, %v719_v47 }
 0x12e   : > { %v1019_v41 = vadd.f32 %v1785_v24, %v1018_v37  ;;  %v1087_v42 = vadd.f32 %v1086_v36, %v1056_v39 }
 0x130   : > { %v1020_v10 = vadd.f32 %v1791_v38, %v1019_v41  ;;  %v1088_v44 = vadd.f32 %v1087_v42, %v1057_v0 }
 0x132   : > { %v1021_v46 = vrot.slane %v1020_v10, 4  ;;  %v1089_v48 = vadd.f32 %v1088_v44, %v1058_v43 }
 0x134   : > { %v1022_v32 = vadd.f32 %v1021_v46, %v1020_v10  ;;  %v1090_v49 = vrot.slane %v1089_v48, 4 }
 0x136   : > { %v1023_v51 = vrot.slane %v1022_v32, 2  ;;  %v1091_v47 = vadd.f32 %v1090_v49, %v1089_v48 }
 0x138   : > { %v1024_v52 = vadd.f32 %v1023_v51, %v1022_v32  ;;  %v1092_v53 = vrot.slane %v1091_v47, 2 }
 0x13a   : > { %v1025_v54 = vrot.slane %v1024_v52, 1  ;;  %v1093_v24 = vadd.f32 %v1092_v53, %v1091_v47 }
 0x13c   : > { %v1026_v55 = vadd.f32 %v1025_v54, %v1024_v52  ;;  %v1094_v56 = vrot.slane %v1093_v24, 1 }
 0x13e   : > { %v1095_v38 = vadd.f32 %v1094_v56, %v1093_v24  ;;  %1096 = vst [vmem:[%s301_s24] sm:$0xff] %v1026_v55 }
 0x140   : > { %1097 = vst [vmem:[%s308_s27] sm:$0xff] %v1095_v38 }
 0x141 PF: > { %s15_s17 = sadd.s32 1, %s1634_s17   ;;  %s1867_s15 = smov %s1630_s16 }
 0x142   : > { %p12_p6 = scmp.ge.s32.totalorder %s15_s17, 4   ;;  %s1868_s16 = smov %s1870_s18 }
 0x144   :  { %14 = sbr.rel (!%p12_p6) target bundleno = 2 (0x2), region = 93 }

</bundles_post_ra>
